<compile_context>
chip_gen: v5e
topology: v5e:2x2
jax: 0.10.0
libtpu: 0.0.40
codegen_flags: <defaults>
</compile_context>

<pallas_src>
import jax
import jax.numpy as jnp
from jax.experimental import pallas as pl
from jax.experimental.pallas import tpu as pltpu

_LANES = 128
_TARGET_F32_TILE_BYTES = 8 << 20   # ~8 MiB of f32 working set per x tile
_VMEM_CAP_BYTES = 48 << 20         # stay well inside v7x's 64 MiB/TC VMEM


def _decoder_kernel(x_ref, w_ref, b_ref, o_ref):
    """sigmoid(x @ w.T + b) for one row tile.

    x_ref: (rows, D)            rows of this tile (rows % 128 == 0)
    w_ref: (1, D)               weight row, resident across the whole grid
    b_ref: (1,)                 bias scalar in SMEM
    o_ref: (1, rows//128, 128)  lane-dense sigmoid outputs for this tile
    """
    x = x_ref[...].astype(jnp.float32)
    w = w_ref[...].astype(jnp.float32)          # (1, D), broadcasts over rows
    # VPU multiply + lane (XLU) reduction with f32 accumulation; MXU stays free.
    z = jnp.sum(x * w, axis=-1) + b_ref[0]      # (rows,)
    # Exact sigmoid: exp runs on the EUP; keep the exact divide so results stay
    # bit-close to torch.sigmoid (approx reciprocal would loosen tolerances).
    sig = 1.0 / (1.0 + jnp.exp(-z))
    o_ref[...] = sig.reshape(o_ref.shape).astype(o_ref.dtype)


def _run_decoder(x2d, w, b, *, row_tile, num_tiles, vmem_limit):
    """Run the kernel over the first num_tiles*row_tile rows of x2d."""
    _, d = x2d.shape
    groups = row_tile // _LANES
    out = pl.pallas_call(
        _decoder_kernel,
        out_shape=jax.ShapeDtypeStruct((num_tiles, groups, _LANES), x2d.dtype),
        grid=(num_tiles,),
        in_specs=[
            pl.BlockSpec((row_tile, d), lambda i: (i, 0)),      # pipelined x tile
            pl.BlockSpec((1, d), lambda i: (0, 0)),             # resident weight row
            pl.BlockSpec(memory_space=pltpu.MemorySpace.SMEM),  # bias scalar
        ],
        out_specs=pl.BlockSpec((1, groups, _LANES), lambda i: (i, 0, 0)),
        compiler_params=pltpu.CompilerParams(
            dimension_semantics=("parallel",),
            vmem_limit_bytes=int(vmem_limit),
        ),
    )(x2d, w, b)
    # (num_tiles, groups, 128) flattens row-major to exactly the row order.
    return out.reshape(num_tiles * row_tile)


def baseline_decoder(x, w, b):
    """sigmoid(x @ w.T + b), matching BaselineDecoder.forward.

    x: (B, S, D); w: (1, D) (nn.Linear weight, out_features=1); b: (1,).
    Returns (B, S, 1).
    """
    B, S, D = x.shape
    N = B * S
    itemsize = jnp.dtype(x.dtype).itemsize
    padded_d = pl.cdiv(D, _LANES) * _LANES      # VMEM lane padding of the tile

    # Row tile: ~8 MiB of f32 working footprint, >= 128 rows, multiple of 128.
    rows_target = (_TARGET_F32_TILE_BYTES // (4 * padded_d) // _LANES) * _LANES
    row_tile = max(_LANES, rows_target)
    # v7x megacore: keep at least two "parallel" grid steps when there is
    # enough work so both TensorCores stream concurrently.
    if N >= 2 * _LANES:
        row_tile = min(row_tile, max(_LANES, (N // 2 // _LANES) * _LANES))

    num_tiles = N // row_tile
    main_rows = num_tiles * row_tile
    tail_rows = N - main_rows

    def vmem_needed(rows):
        x_tile = rows * padded_d * itemsize      # one (lane-padded) x buffer
        f32_tmp = rows * padded_d * 4            # upcast / product temporaries
        out_tile = rows * 4
        return 2 * x_tile + 2 * f32_tmp + 2 * out_tile + (2 << 20)

    # Hard byte check (huge d_model): even the minimum tile must fit VMEM.
    # TODO(synk): chunk over d_model inside the kernel for d_model this large.
    if vmem_needed(row_tile) > _VMEM_CAP_BYTES:
        raise ValueError(
            f"BaselineDecoder Pallas kernel: d_model={D} is too large for a "
            f"single row tile to fit in TPU VMEM.")

    xf = x.reshape(N, D)   # pure reshape, no HBM copy
    pieces = []
    if num_tiles > 0:
        vmem_limit = min(max(vmem_needed(row_tile), 16 << 20), _VMEM_CAP_BYTES)
        pieces.append(
            _run_decoder(xf, w, b, row_tile=row_tile, num_tiles=num_tiles,
                         vmem_limit=vmem_limit))
    if tail_rows > 0:
        # Tail (< row_tile rows): pad only the tail up to a 128-row multiple
        # and run one grid step.  Padded rows compute sigmoid(b) and are
        # sliced off below.
        gt = pl.cdiv(tail_rows, _LANES)
        x_tail = jnp.pad(xf[main_rows:], ((0, gt * _LANES - tail_rows), (0, 0)))
        vmem_limit = min(max(vmem_needed(gt * _LANES), 16 << 20), _VMEM_CAP_BYTES)
        tail_out = _run_decoder(x_tail, w, b, row_tile=gt * _LANES, num_tiles=1,
                                vmem_limit=vmem_limit)
        pieces.append(tail_out[:tail_rows])

    out = pieces[0] if len(pieces) == 1 else jnp.concatenate(pieces)
    return out.reshape(B, S, 1)


def init_params(key, d_model, dtype=jnp.float32):
    # nn.Linear default init: U(-1/sqrt(d), 1/sqrt(d)); weight stored (1, D)
    # like PyTorch's (out_features, in_features), bias shape (1,).
    kw, kb = jax.random.split(key)
    bound = 1.0 / jnp.sqrt(jnp.asarray(d_model, dtype))
    w = jax.random.uniform(kw, (1, d_model), dtype, minval=-bound, maxval=bound)
    b = jax.random.uniform(kb, (1,), dtype, minval=-bound, maxval=bound)
    return w, b


if __name__ == "__main__":
    key = jax.random.PRNGKey(0)
    kx, kp, kx2 = jax.random.split(key, 3)

    # Small shapes matching the module (d_model=32, batch=2, seq=8).
    B, S, D = 2, 8, 32
    x = jax.random.normal(kx, (B, S, D), dtype=jnp.float32)
    w, b = init_params(kp, D)

    y = jax.block_until_ready(baseline_decoder(x, w, b))
    y_ref = jax.nn.sigmoid(x.reshape(-1, D) @ w.T + b).reshape(B, S, 1)
    assert y.shape == (B, S, 1)
    assert jnp.allclose(y, y_ref, atol=1e-5, rtol=1e-5), float(
        jnp.max(jnp.abs(y - y_ref)))

    # Second small check that exercises the multi-tile main grid + tail path.
    B2, S2 = 3, 130   # N = 390 -> 3 main tiles of 128 rows + 6-row tail
    x2 = jax.random.normal(kx2, (B2, S2, D), dtype=jnp.float32)
    y2 = jax.block_until_ready(baseline_decoder(x2, w, b))
    y2_ref = jax.nn.sigmoid(x2.reshape(-1, D) @ w.T + b).reshape(B2, S2, 1)
    assert y2.shape == (B2, S2, 1)
    assert jnp.allclose(y2, y2_ref, atol=1e-5, rtol=1e-5), float(
        jnp.max(jnp.abs(y2 - y2_ref)))

    print("KERNEL_OK")
</pallas_src>

<mosaic_0001>
module attributes {stable_mosaic.version = 11 : i64} {
  func.func @_decoder_kernel(%arg0: i32, %arg1: memref<128x32xf32, #tpu.memory_space<vmem>>, %arg2: memref<1x32xf32, #tpu.memory_space<vmem>>, %arg3: memref<1xf32, #tpu.memory_space<smem>>, %arg4: memref<1x1x128xf32, #tpu.memory_space<vmem>>) attributes {dimension_semantics = [#tpu.dimension_semantics<parallel>], iteration_bounds = array<i64: 1>, scalar_prefetch = 0 : i64, scratch_operands = 0 : i64, tpu.core_type = #tpu.core_type<tc>, window_params = [{transform_indices = @transform_0, window_bounds = array<i64: 128, 32>}, {pipeline_mode = #tpu.pipeline_mode<synchronous>, transform_indices = @transform_1, window_bounds = array<i64: 1, 32>}, {transform_indices = @transform_2, window_bounds = array<i64: 1>}, {transform_indices = @transform_3, window_bounds = array<i64: 1, 1, 128>}]} {
    %c0 = arith.constant 0 : index
    %c0_0 = arith.constant 0 : index
    %0 = vector.load %arg1[%c0, %c0_0] : memref<128x32xf32, #tpu.memory_space<vmem>>, vector<128x32xf32>
    %c0_1 = arith.constant 0 : index
    %c0_2 = arith.constant 0 : index
    %1 = vector.load %arg2[%c0_1, %c0_2] : memref<1x32xf32, #tpu.memory_space<vmem>>, vector<1x32xf32>
    %2 = vector.broadcast %1 : vector<1x32xf32> to vector<128x32xf32>
    %3 = arith.mulf %0, %2 : vector<128x32xf32>
    %cst = arith.constant dense<0.000000e+00> : vector<128xf32>
    %4 = vector.multi_reduction <add>, %3, %cst [1] : vector<128x32xf32> to vector<128xf32>
    %c0_3 = arith.constant 0 : index
    %5 = memref.load %arg3[%c0_3] : memref<1xf32, #tpu.memory_space<smem>>
    %6 = vector.broadcast %5 : f32 to vector<128xf32>
    %7 = arith.addf %4, %6 : vector<128xf32>
    %cst_4 = arith.constant 0.000000e+00 : f32
    %8 = vector.broadcast %cst_4 : f32 to vector<128xf32>
    %9 = arith.subf %8, %7 : vector<128xf32>
    %10 = math.exp %9 : vector<128xf32>
    %cst_5 = arith.constant 1.000000e+00 : f32
    %11 = vector.broadcast %cst_5 : f32 to vector<128xf32>
    %12 = arith.addf %11, %10 : vector<128xf32>
    %cst_6 = arith.constant 1.000000e+00 : f32
    %13 = vector.broadcast %cst_6 : f32 to vector<128xf32>
    %14 = arith.divf %13, %12 : vector<128xf32>
    %15 = vector.shape_cast %14 : vector<128xf32> to vector<1x1x128xf32>
    %c0_7 = arith.constant 0 : index
    %c0_8 = arith.constant 0 : index
    %c0_9 = arith.constant 0 : index
    %16 = vector.load %arg4[%c0_7, %c0_8, %c0_9] : memref<1x1x128xf32, #tpu.memory_space<vmem>>, vector<1x1x128xf32>
    tpu.vector_store %arg4[%c0_7, %c0_8, %c0_9], %15 {strides = array<i32>} : memref<1x1x128xf32, #tpu.memory_space<vmem>>, vector<1x1x128xf32>,
    return
  }
  func.func @transform_0(%arg0: i32) -> (i32, i32) {
    %c0_i32 = arith.constant 0 : i32
    %c0_i32_0 = arith.constant 0 : i32
    return %arg0, %c0_i32 : i32, i32
  }
  func.func @transform_1(%arg0: i32) -> (i32, i32) {
    %c0_i32 = arith.constant 0 : i32
    %c0_i32_0 = arith.constant 0 : i32
    %c0_i32_1 = arith.constant 0 : i32
    return %c0_i32, %c0_i32_0 : i32, i32
  }
  func.func @transform_2(%arg0: i32) -> i32 {
    %c0_i32 = arith.constant 0 : i32
    %c0_i32_0 = arith.constant 0 : i32
    return %c0_i32 : i32
  }
  func.func @transform_3(%arg0: i32) -> (i32, i32, i32) {
    %c0_i32 = arith.constant 0 : i32
    %c0_i32_0 = arith.constant 0 : i32
    %c0_i32_1 = arith.constant 0 : i32
    return %arg0, %c0_i32, %c0_i32_0 : i32, i32, i32
  }
}

</mosaic_0001>

<bundles_post_ra>
// kernel: tpu_custom_call.1
= control target key start
LH: loop header
LB: loop body
LE: loop exit
PB: predicated region body
PF: predicated region fallthrough
CT: control target
= control target key end

     0   :  { %vm52_vm0 = vcmask 261120   ;;  %s1250_s0 = inlined_call_operand.vmem [shape: f32[128,32], index: 0, kind: input, shape index: {}]   ;;  %s1251_s1 = inlined_call_operand.vmem [shape: f32[1,32], index: 1, kind: input, shape index: {}]   ;;  %s1252_s2 = inlined_call_operand.<no memory space> [shape: f32[1], index: 2, kind: input, shape index: {}]   ;;  %s1253_s3 = inlined_call_operand.hbm [shape: f32[1,1,128], index: 3, kind: output, shape index: {}]  }
   0x1   :  { %v20_v0 = vld [vmem:[%s1250_s0 + $0x20] sm:$0xff]  ;;  %v18_v2 = vld [vmem:[%s1250_s0 + $0x10] sm:$0xff]  ;;  %v21_v7 = vld [vmem:[%s1250_s0 + $0x28] sm:$0xff] }
   0x2   :  { %v639_v1 = vld [vmem:[%s1251_s1] ss:$0 sm:$0xff]  ;;  %v19_v8 = vld [vmem:[%s1250_s0 + $0x18] sm:$0xff]  ;;  %v17_v12 = vld [vmem:[%s1250_s0 + $0x8] sm:$0xff] }
   0x3   :  { %v16_v3 = vld [vmem:[%s1250_s0] sm:$0xff]  ;;  %v40_v4 = vmul.f32 %v639_v1, %v20_v0  ;;  %v38_v5 = vmul.f32 %v639_v1, %v18_v2  ;;  %v41_v13 = vmul.f32 %v639_v1, %v21_v7  ;;  %v39_v14 = vmul.f32 %v639_v1, %v19_v8 }
   0x4   :  { %v36_v6 = vmul.f32 %v639_v1, %v16_v3 }
   0x5   :  { %v65_v9 = vsel %vm52_vm0, %v40_v4, 0.0  ;;  %v59_v10 = vsel %vm52_vm0, %v38_v5, 0.0 }
   0x6   :  { %v53_v11 = vsel %vm52_vm0, %v36_v6, 0.0  ;;  %66 = vadd.xlane.f32.xlu2 %v65_v9  ;;  %60 = vadd.xlane.f32.xlu1 %v59_v10 }
   0x7   :  { %54 = vadd.xlane.f32.xlu0 %v53_v11 }
   0x8   :  { %9 = vsyncpa [#allocation4], 0  ;;  %v37_v15 = vmul.f32 %v639_v1, %v17_v12  ;;  %v68_v16 = vsel %vm52_vm0, %v41_v13, 0.0  ;;  %v62_v17 = vsel %vm52_vm0, %v39_v14, 0.0  ;;  %v24_v19 = vld [vmem:[%s1250_s0 + $0x40] sm:$0xff]  ;;  %v23_v20 = vld [vmem:[%s1250_s0 + $0x38] sm:$0xff]  ;;  %v721_v49 = vstv %s1252_s2 }
   0x9   :  { %v22_v21 = vld [vmem:[%s1250_s0 + $0x30] sm:$0xff]  ;;  %v44_v22 = vmul.f32 %v639_v1, %v24_v19  ;;  %v43_v23 = vmul.f32 %v639_v1, %v23_v20  ;;  %v27_v28 = vld [vmem:[%s1250_s0 + $0x58] sm:$0xff]  ;;  %v25_v30 = vld [vmem:[%s1250_s0 + $0x48] sm:$0xff]  ;;  %s511_s1 = sshll.u32 %s1253_s3, 4  ;;  %s512_s1 = int_to_ptr.hbm [resolvable:$true] %s511_s1 }
   0xa   :  { %v56_v18 = vsel %vm52_vm0, %v37_v15, 0.0  ;;  %v42_v24 = vmul.f32 %v639_v1, %v22_v21  ;;  %v26_v29 = vld [vmem:[%s1250_s0 + $0x50] sm:$0xff]  ;;  %v47_v31 = vmul.f32 %v639_v1, %v27_v28  ;;  %v45_v33 = vmul.f32 %v639_v1, %v25_v30  ;;  %v29_v38 = vld [vmem:[%s1250_s0 + $0x68] sm:$0xff]  ;;  %v28_v39 = vld [vmem:[%s1250_s0 + $0x60] sm:$0xff] }
   0xb   :  { %v77_v25 = vsel %vm52_vm0, %v44_v22, 0.0  ;;  %v74_v26 = vsel %vm52_vm0, %v43_v23, 0.0  ;;  %v46_v32 = vmul.f32 %v639_v1, %v26_v29  ;;  %v30_v37 = vld [vmem:[%s1250_s0 + $0x70] sm:$0xff]  ;;  %v49_v41 = vmul.f32 %v639_v1, %v29_v38  ;;  %v31_v46 = vld [vmem:[%s1250_s0 + $0x78] sm:$0xff]  ;;  %s612_s0 = smov [#allocation3]  }
   0xc   :  { %v71_v27 = vsel %vm52_vm0, %v42_v24, 0.0  ;;  %v86_v34 = vsel %vm52_vm0, %v47_v31, 0.0  ;;  %v80_v36 = vsel %vm52_vm0, %v45_v33, 0.0  ;;  %v50_v40 = vmul.f32 %v639_v1, %v30_v37  ;;  %s509_s2 = sshll.u32 %s612_s0, 4  ;;  %s510_s2 = int_to_ptr.vmem [resolvable:$true] %s509_s2 }
   0xd   :  { %v83_v35 = vsel %vm52_vm0, %v46_v32, 0.0  ;;  %v48_v42 = vmul.f32 %v639_v1, %v28_v39  ;;  %v92_v44 = vsel %vm52_vm0, %v49_v41, 0.0  ;;  %v51_v47 = vmul.f32 %v639_v1, %v31_v46 }
   0xe   :  { %69 = vadd.xlane.f32.xlu2 %v68_v16  ;;  %63 = vadd.xlane.f32.xlu1 %v62_v17  ;;  %v95_v43 = vsel %vm52_vm0, %v50_v40, 0.0  ;;  %v439_v15 = vlaneseq }
   0xf   :  { %57 = vadd.xlane.f32.xlu0 %v56_v18  ;;  %v89_v45 = vsel %vm52_vm0, %v48_v42, 0.0  ;;  %v98_v48 = vsel %vm52_vm0, %v51_v47, 0.0 }
  0x10   :  { %v737_v18 = vand.u32 127, %v439_v15 }
  0x12   :  { %v757_v31 = vadd.s32 4294967280, %v737_v18  ;;  %v773_v40 = vadd.s32 4294967272, %v737_v18  ;;  %v776_v41 = vadd.s32 4294967288, %v737_v18 }
  0x16   :  { %78 = vadd.xlane.f32.xlu2 %v77_v25  ;;  %75 = vadd.xlane.f32.xlu1 %v74_v26  ;;  %v750_v26 = vadd.s32 4294967264, %v737_v18 }
  0x17   :  { %72 = vadd.xlane.f32.xlu0 %v71_v27 }
  0x1e   :  { %87 = vadd.xlane.f32.xlu2 %v86_v34  ;;  %84 = vadd.xlane.f32.xlu1 %v83_v35 }
  0x1f   :  { %81 = vadd.xlane.f32.xlu0 %v80_v36  ;;  %v765_v36 = vadd.s32 4294967256, %v737_v18 }
  0x26   :  { %96 = vadd.xlane.f32.xlu2 %v95_v43  ;;  %93 = vadd.xlane.f32.xlu1 %v92_v44 }
  0x27   :  { %90 = vadd.xlane.f32.xlu0 %v89_v45 }
  0x2f   :  { %99 = vadd.xlane.f32.xlu0 %v98_v48 }
  0x79   :  { %v67_v50 = vpop.xlane.xlu2 %66  ;;  %v61_v51 = vpop.xlane.xlu1 %60 }
  0x7a   :  { %v107_v52 = vadd.f32 %v721_v49, %v67_v50  ;;  %v105_v53 = vadd.f32 %v721_v49, %v61_v51  ;;  %v55_v54 = vpop.xlane.xlu0 %54 }
  0x7b   :  { %v103_v55 = vadd.f32 %v721_v49, %v55_v54 }
  0x7c   :  { %v123_v56 = vsub.f32 0.0, %v107_v52  ;;  %v121_v57 = vsub.f32 0.0, %v105_v53 }
  0x7d   :  { %v119_v58 = vsub.f32 0.0, %v103_v55 }
  0x7e   :  { %v143_v59 = vmul.f32 1.442695, %v123_v56  ;;  %v139_v60 = vmul.f32 1.442695, %v121_v57 }
  0x7f   :  { %v135_v61 = vmul.f32 1.442695, %v119_v58  ;;  %v797_v58 = vadd.s32 4294967232, %v737_v18 }
  0x80   :  { %522 = vpow2.f32 %v143_v59 }
  0x81   :  { %524 = vpow2.f32 %v139_v60  ;;  %v70_v62 = vpop.xlane.xlu2 %69  ;;  %v64_v63 = vpop.xlane.xlu1 %63 }
  0x82   :  { %526 = vpow2.f32 %v135_v61  ;;  %v108_v0 = vadd.f32 %v721_v49, %v70_v62  ;;  %v106_v1 = vadd.f32 %v721_v49, %v64_v63  ;;  %v58_v2 = vpop.xlane.xlu0 %57 }
  0x83   :  { %v104_v3 = vadd.f32 %v721_v49, %v58_v2 }
  0x84   :  { %v124_v4 = vsub.f32 0.0, %v108_v0  ;;  %v122_v5 = vsub.f32 0.0, %v106_v1 }
  0x85   :  { %v120_v6 = vsub.f32 0.0, %v104_v3  ;;  %v816_v3 = vadd.s32 4294967240, %v737_v18 }
  0x86   :  { %v523_v7 = vpop.eup %522  ;;  %v145_v8 = vmul.f32 1.442695, %v124_v4  ;;  %v141_v11 = vmul.f32 1.442695, %v122_v5 }
  0x87   :  { %v525_v9 = vpop.eup %524  ;;  %v729_v10 = vadd.f32 1.0, %v523_v7  ;;  %v137_v14 = vmul.f32 1.442695, %v120_v6 }
  0x88   :  { %v527_v12 = vpop.eup %526  ;;  %v731_v13 = vadd.f32 1.0, %v525_v9  ;;  %528 = vpow2.f32 %v145_v8 }
  0x89   :  { %530 = vrcp.f32 %v729_v10  ;;  %v735_v16 = vadd.f32 1.0, %v527_v12  ;;  %v79_v17 = vpop.xlane.xlu2 %78  ;;  %v254_v30 = vand.u32 2147483648, %v729_v10  ;;  %v76_v33 = vpop.xlane.xlu1 %75  ;;  %vm248_vm1 = vweird.f32 %v729_v10 }
  0x8a   :  { %532 = vrcp.f32 %v731_v13  ;;  %v111_v22 = vadd.f32 %v721_v49, %v79_v17  ;;  %v224_v35 = vand.u32 2147483648, %v731_v13  ;;  %v73_v42 = vpop.xlane.xlu0 %72  ;;  %v110_v45 = vadd.f32 %v721_v49, %v76_v33 }
  0x8b   :  { %534 = vpow2.f32 %v141_v11  ;;  %v194_v44 = vand.u32 2147483648, %v735_v16  ;;  %v252_v47 = vand.u32 2147483647, %v729_v10  ;;  %v783_v48 = vor.u32 1.1754944e-38, %v254_v30 }
  0x8c   :  { %536 = vpow2.f32 %v137_v14  ;;  %v127_v38 = vsub.f32 0.0, %v111_v22  ;;  %v222_v50 = vand.u32 2147483647, %v731_v13  ;;  %vm218_vm2 = vweird.f32 %v731_v13 }
  0x8d   :  { %538 = vrcp.f32 %v735_v16  ;;  %v789_v52 = vor.u32 1.1754944e-38, %v224_v35  ;;  %v192_v56 = vand.u32 2147483647, %v735_v16  ;;  %v800_v60 = vor.u32 1.1754944e-38, %v194_v44 }
  0x8e   :  { %v529_v19 = vpop.eup %528  ;;  %v151_v54 = vmul.f32 1.442695, %v127_v38  ;;  %v126_v61 = vsub.f32 0.0, %v110_v45  ;;  %v109_v62 = vadd.f32 %v721_v49, %v73_v42  ;;  %vm188_vm5 = vweird.f32 %v735_v16 }
  0x8f   :  { %v740_v20 = vpop.eup %530  ;;  %v742_v21 = vadd.f32 1.0, %v529_v19  ;;  %vm841_vm11 = vcmp.eq.f32.partialorder %v252_v47, 8.507059e+37  ;;  %vm845_vm12 = vcmp.eq.f32.partialorder %v222_v50, 8.507059e+37  ;;  %vm855_vm14 = vcmp.eq.f32.partialorder %v192_v56, 8.507059e+37 }
  0x90   :  { %v745_v23 = vpop.eup %532  ;;  %v244_v24 = vmul.f32 %v740_v20, %v729_v10  ;;  %vm249_vm3 = vweird.f32 %v740_v20  ;;  %v149_v15 = vmul.f32 1.442695, %v126_v61 }
  0x91   :  { %v535_v25 = vpop.eup %534  ;;  %v214_v27 = vmul.f32 %v745_v23, %v731_v13  ;;  %540 = vrcp.f32 %v742_v21  ;;  %v269_v53 = vand.u32 2147483648, %v742_v21  ;;  %vm219_vm4 = vweird.f32 %v745_v23  ;;  %v88_v8 = vpop.xlane.xlu2 %87  ;;  %vm829_vm8 = vmor %vm248_vm1, %vm249_vm3 }
  0x92   :  { %v537_v28 = vpop.eup %536  ;;  %v245_v29 = vsub.f32 1.0, %v244_v24  ;;  %v759_v32 = vadd.f32 1.0, %v535_v25  ;;  %v267_v0 = vand.u32 2147483647, %v742_v21  ;;  %vm263_vm7 = vweird.f32 %v742_v21  ;;  %v85_v17 = vpop.xlane.xlu1 %84  ;;  %vm867_vm15 = vmor %vm218_vm2, %vm219_vm4 }
  0x93   :  { %v761_v34 = vpop.eup %538  ;;  %v767_v37 = vadd.f32 1.0, %v537_v28  ;;  %v215_v43 = vsub.f32 1.0, %v214_v27  ;;  %v813_v2 = vor.u32 1.1754944e-38, %v269_v53  ;;  %v82_v28 = vpop.xlane.xlu0 %81  ;;  %vm444_vm3 = vcmask 130112  }
  0x94   :  { %v184_v39 = vmul.f32 %v761_v34, %v735_v16  ;;  %542 = vrcp.f32 %v759_v32  ;;  %v246_v46 = vmul.f32 %v740_v20, %v245_v29  ;;  %vm189_vm6 = vweird.f32 %v761_v34 }
  0x95   :  { %544 = vrcp.f32 %v767_v37  ;;  %v216_v59 = vmul.f32 %v745_v23, %v215_v43  ;;  %v237_v7 = vand.u32 2147483647, %v759_v32  ;;  %vm233_vm9 = vweird.f32 %v759_v32  ;;  %vm887_vm2 = vmor %vm188_vm5, %vm189_vm6 }
  0x96   :  { %v185_v55 = vsub.f32 1.0, %v184_v39  ;;  %v804_v63 = vadd.f32 %v740_v20, %v246_v46  ;;  %546 = vpow2.f32 %v151_v54  ;;  %v239_v14 = vand.u32 2147483648, %v759_v32 }
  0x97   :  { %v786_v51 = vpop.eup %540  ;;  %v217_v12 = vadd.f32 %v745_v23, %v216_v59  ;;  %vm203_vm10 = vweird.f32 %v767_v37  ;;  %v207_v27 = vand.u32 2147483647, %v767_v37  ;;  %548 = vpow2.f32 %v149_v15 }
  0x98   :  { %v259_v57 = vmul.f32 %v786_v51, %v742_v21  ;;  %v186_v4 = vmul.f32 %v761_v34, %v185_v55  ;;  %v251_v19 = vsel %vm829_vm8, %v740_v20, %v804_v63  ;;  %vm264_vm13 = vweird.f32 %v786_v51 }
  0x99   :  { %v125_v29 = vsub.f32 0.0, %v109_v62  ;;  %v114_v20 = vadd.f32 %v721_v49, %v88_v8  ;;  %v113_v39 = vadd.f32 %v721_v49, %v85_v17  ;;  %v112_v46 = vadd.f32 %v721_v49, %v82_v28  ;;  %vm924_vm6 = vmor %vm263_vm7, %vm264_vm13 }
  0x9a   :  { %v810_v1 = vpop.eup %542  ;;  %v260_v5 = vsub.f32 1.0, %v259_v57  ;;  %v187_v30 = vadd.f32 %v761_v34, %v186_v4  ;;  %vm871_vm0 = vcmp.eq.f32.partialorder %v267_v0, 8.507059e+37  ;;  %v209_v54 = vand.u32 2147483648, %v767_v37 }
  0x9b   :  { %v229_v6 = vmul.f32 %v810_v1, %v759_v32  ;;  %v823_v9 = vpop.eup %544  ;;  %v147_v44 = vmul.f32 1.442695, %v125_v29  ;;  %v130_v45 = vsub.f32 0.0, %v114_v20  ;;  %v221_v13 = vsel %vm867_vm15, %v745_v23, %v217_v12 }
  0x9c   :  { %v199_v25 = vmul.f32 %v823_v9, %v767_v37  ;;  %v261_v35 = vmul.f32 %v786_v51, %v260_v5  ;;  %v547_v42 = vpop.eup %546  ;;  %vm204_vm1 = vweird.f32 %v823_v9  ;;  %v129_v59 = vsub.f32 0.0, %v113_v39 }
  0x9d   :  { %v230_v24 = vsub.f32 1.0, %v229_v6  ;;  %v878_v55 = vadd.f32 1.0, %v547_v42  ;;  %550 = vpow2.f32 %v147_v44  ;;  %v157_v57 = vmul.f32 1.442695, %v130_v45  ;;  %v549_v63 = vpop.eup %548  ;;  %vm903_vm5 = vmor %vm203_vm10, %vm204_vm1 }
  0x9e   :  { %v200_v38 = vsub.f32 1.0, %v199_v25  ;;  %v191_v61 = vsel %vm887_vm2, %v761_v34, %v187_v30  ;;  %v262_v62 = vadd.f32 %v786_v51, %v261_v35  ;;  %vm234_vm4 = vweird.f32 %v810_v1 }
  0x9f   :  { %v231_v43 = vmul.f32 %v810_v1, %v230_v24  ;;  %552 = vrcp.f32 %v878_v55  ;;  %v128_v34 = vsub.f32 0.0, %v112_v46  ;;  %v210_v5 = vor.u32 1.1754944e-38, %v209_v54 }
  0xa0   :  { %v201_v53 = vmul.f32 %v823_v9, %v200_v38  ;;  %554 = vpow2.f32 %v157_v57  ;;  %v910_v6 = vadd.f32 1.0, %v549_v63  ;;  %v155_v8 = vmul.f32 1.442695, %v129_v59  ;;  %v91_v38 = vpop.xlane.xlu0 %90 }
  0xa1   :  { %v232_v16 = vadd.f32 %v810_v1, %v231_v43  ;;  %v915_v11 = vsel %vm841_vm11, %v783_v48, %v251_v19  ;;  %v226_v37 = vsel %vm845_vm12, %v789_v52, %v221_v13  ;;  %vm928_vm8 = vcmp.eq.f32.partialorder %v237_v7, 8.507059e+37  ;;  %v97_v48 = vpop.xlane.xlu2 %96  ;;  %vm939_vm11 = vmor %vm233_vm9, %vm234_vm4 }
  0xa2   :  { %v202_v23 = vadd.f32 %v823_v9, %v201_v53  ;;  %vm448_vm10 = vcmask 195712   ;;  %vm208_vm15 = vcmp.eq.f32.partialorder %v207_v27, 8.507059e+37  ;;  %v266_v15 = vsel %vm924_vm6, %v786_v51, %v262_v62 }
  0xa3   :  { %v240_v52 = vor.u32 1.1754944e-38, %v239_v14  ;;  %556 = vrcp.f32 %v910_v6  ;;  %v551_v17 = vpop.eup %550  ;;  %v196_v19 = vsel %vm855_vm14, %v800_v60, %v191_v61  ;;  %v236_v51 = vsel %vm939_vm11, %v810_v1, %v232_v16 }
  0xa4   :  { %v206_v4 = vsel %vm903_vm5, %v823_v9, %v202_v23  ;;  %558 = vpow2.f32 %v155_v8  ;;  %v153_v10 = vmul.f32 1.442695, %v128_v34  ;;  %v455_v22 = vperm.slane %v915_v11, %v750_v26 }
  0xa5   :  { %v211_v7 = vsel %vm208_vm15, %v210_v5, %v206_v4  ;;  %v950_v32 = vpop.eup %552  ;;  %v447_v14 = vperm.slane %v226_v37, %v757_v31  ;;  %vm452_vm7 = vcmask 261312   ;;  %v955_v24 = vadd.f32 1.0, %v551_v17  ;;  %v94_v31 = vpop.xlane.xlu1 %93 }
  0xa6   :  { %v117_v25 = vadd.f32 %v721_v49, %v97_v48  ;;  %v555_v27 = vpop.eup %554  ;;  %v961_v60 = vsel %vm871_vm0, %v813_v2, %v266_v15  ;;  %v443_v1 = vperm.slane %v211_v7, %v776_v41  ;;  %v304_v28 = vmul.f32 %v950_v32, %v878_v55 }
  0xa7   :  { %v967_v29 = vadd.s32 4294967248, %v737_v18  ;;  %v441_v20 = vperm.slane %v196_v19, %v737_v18  ;;  %v241_v30 = vsel %vm928_vm8, %v240_v52, %v236_v51  ;;  %v314_v33 = vand.u32 2147483648, %v878_v55 }
  0xa8   :  { %560 = vrcp.f32 %v955_v24  ;;  %v305_v2 = vsub.f32 1.0, %v304_v28  ;;  %v312_v35 = vand.u32 2147483647, %v878_v55  ;;  %v975_v41 = vadd.f32 1.0, %v555_v27  ;;  %v100_v27 = vpop.xlane.xlu0 %99 }
  0xa9   :  { %562 = vpow2.f32 %v153_v10  ;;  %v977_v39 = vpop.eup %556  ;;  %v459_v42 = vperm.slane %v961_v60, %v765_v36  ;;  %vm308_vm9 = vweird.f32 %v878_v55  ;;  %v133_v43 = vsub.f32 0.0, %v117_v25 }
  0xaa   :  { %v116_v44 = vadd.f32 %v721_v49, %v94_v31  ;;  %v559_v45 = vpop.eup %558  ;;  %v451_v46 = vperm.slane %v241_v30, %v773_v40  ;;  %v445_v47 = vsel %vm444_vm3, %v443_v1, %v441_v20  ;;  %v306_v50 = vmul.f32 %v950_v32, %v305_v2 }
  0xab   :  { %v289_v53 = vmul.f32 %v977_v39, %v910_v6  ;;  %v315_v54 = vor.u32 1.1754944e-38, %v314_v33  ;;  %v299_v13 = vand.u32 2147483648, %v910_v6  ;;  %564 = vrcp.f32 %v975_v41 }
  0xac   :  { %v115_v56 = vadd.f32 %v721_v49, %v91_v38  ;;  %vm991_vm12 = vcmp.eq.f32.partialorder %v312_v35, 8.507059e+37  ;;  %v297_v40 = vand.u32 2147483647, %v910_v6  ;;  %v996_v61 = vadd.f32 1.0, %v559_v45 }
  0xad   :  { %v290_v59 = vsub.f32 1.0, %v289_v53  ;;  %v999_v62 = vadd.s32 4294967224, %v737_v18  ;;  %v449_v63 = vsel %vm448_vm10, %v447_v14, %v445_v47  ;;  %vm293_vm13 = vweird.f32 %v910_v6 }
  0xae   :  { %v1001_v23 = vpop.eup %560  ;;  %v163_v16 = vmul.f32 1.442695, %v133_v43  ;;  %v132_v0 = vsub.f32 0.0, %v116_v44  ;;  %v307_v4 = vadd.f32 %v950_v32, %v306_v50  ;;  %vm309_vm14 = vweird.f32 %v950_v32 }
  0xaf   :  { %v563_v34 = vpop.eup %562  ;;  %v291_v5 = vmul.f32 %v977_v39, %v290_v59  ;;  %v274_v8 = vmul.f32 %v1001_v23, %v955_v24  ;;  %v300_v37 = vor.u32 1.1754944e-38, %v299_v13  ;;  %v282_v12 = vand.u32 2147483647, %v955_v24  ;;  %vm1025_vm2 = vmor %vm308_vm9, %vm309_vm14 }
  0xb0   :  { %566 = vrcp.f32 %v996_v61  ;;  %v131_v9 = vsub.f32 0.0, %v115_v56  ;;  %v1013_v48 = vsel %vm452_vm7, %v451_v46, %v449_v63  ;;  %vm1015_vm0 = vcmp.eq.f32.partialorder %v297_v40, 8.507059e+37 }
  0xb1   :  { %v275_v21 = vsub.f32 1.0, %v274_v8  ;;  %vm278_vm1 = vweird.f32 %v955_v24  ;;  %v284_v52 = vand.u32 2147483648, %v955_v24  ;;  %v1021_v7 = vpop.eup %564  ;;  %vm294_vm3 = vweird.f32 %v977_v39 }
  0xb2   :  { %v1030_v19 = vadd.f32 1.0, %v563_v34  ;;  %568 = vpow2.f32 %v163_v16  ;;  %v161_v51 = vmul.f32 1.442695, %v132_v0  ;;  %v311_v10 = vsel %vm1025_vm2, %v950_v32, %v307_v4  ;;  %vm1057_vm8 = vmor %vm293_vm13, %vm294_vm3 }
  0xb3   :  { %v292_v14 = vadd.f32 %v977_v39, %v291_v5  ;;  %v276_v25 = vmul.f32 %v1001_v23, %v275_v21  ;;  %v349_v55 = vmul.f32 %v1021_v7, %v975_v41  ;;  %vm1039_vm4 = vcmp.eq.f32.partialorder %v282_v12, 8.507059e+37 }
  0xb4   :  { %v359_v28 = vand.u32 2147483648, %v975_v41  ;;  %570 = vrcp.f32 %v1030_v19  ;;  %v159_v31 = vmul.f32 1.442695, %v131_v9  ;;  %vm279_vm5 = vweird.f32 %v1001_v23 }
  0xb5   :  { %v285_v32 = vor.u32 1.1754944e-38, %v284_v52  ;;  %v350_v20 = vsub.f32 1.0, %v349_v55  ;;  %vm353_vm6 = vweird.f32 %v975_v41  ;;  %v1051_v33 = vsel %vm991_vm12, %v315_v54, %v311_v10  ;;  %vm1078_vm15 = vmor %vm278_vm1, %vm279_vm5 }
  0xb6   :  { %v1047_v30 = vpop.eup %566  ;;  %v277_v35 = vadd.f32 %v1001_v23, %v276_v25  ;;  %572 = vpow2.f32 %v161_v51  ;;  %v118_v38 = vadd.f32 %v721_v49, %v100_v27  ;;  %v296_v43 = vsel %vm1057_vm8, %v977_v39, %v292_v14 }
  0xb7   :  { %v357_v44 = vand.u32 2147483647, %v975_v41  ;;  %v334_v45 = vmul.f32 %v1047_v30, %v996_v61  ;;  %v344_v6 = vand.u32 2147483648, %v996_v61  ;;  %v360_v47 = vor.u32 1.1754944e-38, %v359_v28 }
  0xb8   :  { %v569_v46 = vpop.eup %568  ;;  %vm338_vm10 = vweird.f32 %v996_v61  ;;  %v342_v50 = vand.u32 2147483647, %v996_v61  ;;  %574 = vpow2.f32 %v159_v31  ;;  %v471_v49 = vperm.slane %v1051_v33, %v797_v58 }
  0xb9   :  { %v351_v53 = vmul.f32 %v1021_v7, %v350_v20  ;;  %v335_v54 = vsub.f32 1.0, %v334_v45  ;;  %v1083_v13 = vadd.f32 1.0, %v569_v46  ;;  %v1089_v57 = vsel %vm1015_vm0, %v300_v37, %v296_v43 }
  0xba   :  { %v1085_v56 = vpop.eup %570  ;;  %v281_v59 = vsel %vm1078_vm15, %v1001_v23, %v277_v35  ;;  %vm354_vm11 = vweird.f32 %v1021_v7  ;;  %v134_v24 = vsub.f32 0.0, %v118_v38  ;;  %vm1095_vm7 = vcmp.eq.f32.partialorder %v357_v44, 8.507059e+37 }
  0xbb   :  { %v336_v63 = vmul.f32 %v1047_v30, %v335_v54  ;;  %v345_v16 = vor.u32 1.1754944e-38, %v344_v6  ;;  %v319_v0 = vmul.f32 %v1085_v56, %v1030_v19  ;;  %vm456_vm9 = vcmask 326912   ;;  %vm1130_vm1 = vmor %vm353_vm6, %vm354_vm11 }
  0xbc   :  { %v573_v34 = vpop.eup %572  ;;  %v327_v4 = vand.u32 2147483647, %v1030_v19  ;;  %v329_v5 = vand.u32 2147483648, %v1030_v19  ;;  %576 = vrcp.f32 %v1083_v13  ;;  %v165_v23 = vmul.f32 1.442695, %v134_v24 }
  0xbd   :  { %v286_v8 = vsel %vm1039_vm4, %v285_v32, %v281_v59  ;;  %v352_v37 = vadd.f32 %v1021_v7, %v351_v53  ;;  %vm1108_vm12 = vcmp.eq.f32.partialorder %v342_v50, 8.507059e+37  ;;  %v320_v9 = vsub.f32 1.0, %v319_v0 }
  0xbe   :  { %v1112_v15 = vadd.f32 1.0, %v573_v34  ;;  %v575_v21 = vpop.eup %574  ;;  %vm339_vm13 = vweird.f32 %v1047_v30  ;;  %578 = vpow2.f32 %v165_v23  ;;  %v457_v52 = vsel %vm456_vm9, %v455_v22, %v1013_v48 }
  0xbf   :  { %vm460_vm14 = vcmask 392512   ;;  %v337_v17 = vadd.f32 %v1047_v30, %v336_v63  ;;  %v321_v51 = vmul.f32 %v1085_v56, %v320_v9  ;;  %vm324_vm0 = vweird.f32 %v1085_v56  ;;  %vm1142_vm3 = vmor %vm338_vm10, %vm339_vm13 }
  0xc0   :  { %580 = vrcp.f32 %v1112_v15  ;;  %v467_v10 = vperm.slane %v1089_v57, %v816_v3  ;;  %v463_v14 = vperm.slane %v286_v8, %v967_v29  ;;  %vm323_vm2 = vweird.f32 %v1030_v19 }
  0xc1   :  { %v1135_v11 = vadd.f32 1.0, %v575_v21  ;;  %v356_v22 = vsel %vm1130_vm1, %v1021_v7, %v352_v37  ;;  %v322_v29 = vadd.f32 %v1085_v56, %v321_v51  ;;  %v404_v41 = vand.u32 2147483648, %v1083_v13  ;;  %vm1150_vm5 = vmor %vm323_vm2, %vm324_vm0 }
  0xc2   :  { %vm464_vm4 = vcmask 458112   ;;  %v1148_v48 = vpop.eup %576  ;;  %vm1154_vm6 = vcmp.eq.f32.partialorder %v327_v4, 8.507059e+37  ;;  %v330_v61 = vor.u32 1.1754944e-38, %v329_v5  ;;  %v461_v7 = vsel %vm460_vm14, %v459_v42, %v457_v52 }
  0xc3   :  { %582 = vrcp.f32 %v1135_v11  ;;  %v341_v55 = vsel %vm1142_vm3, %v1047_v30, %v337_v17  ;;  %v326_v27 = vsel %vm1150_vm5, %v1085_v56, %v322_v29  ;;  %v394_v1 = vmul.f32 %v1148_v48, %v1083_v13 }
  0xc4   :  { %v389_v28 = vand.u32 2147483648, %v1112_v15  ;;  %v579_v31 = vpop.eup %578  ;;  %vm398_vm8 = vweird.f32 %v1083_v13  ;;  %v1175_v36 = vsel %vm1095_vm7, %v360_v47, %v356_v22  ;;  %v402_v60 = vand.u32 2147483647, %v1083_v13 }
  0xc5   :  { %v465_v42 = vsel %vm464_vm4, %v463_v14, %v461_v7  ;;  %vm468_vm10 = vcmask 523712   ;;  %v395_v20 = vsub.f32 1.0, %v394_v1  ;;  %vm383_vm15 = vweird.f32 %v1112_v15 }
  0xc6   :  { %v581_v32 = vpop.eup %580  ;;  %v1179_v30 = vadd.f32 1.0, %v579_v31  ;;  %v1181_v2 = vor.u32 1.1754944e-38, %v404_v41  ;;  %v346_v35 = vsel %vm1108_vm12, %v345_v16, %v341_v55  ;;  %v331_v38 = vsel %vm1154_vm6, %v330_v61, %v326_v27 }
  0xc7   :  { %v379_v43 = vmul.f32 %v581_v32, %v1112_v15  ;;  %v387_v44 = vand.u32 2147483647, %v1112_v15  ;;  %v390_v45 = vor.u32 1.1754944e-38, %v389_v28  ;;  %v372_v6 = vand.u32 2147483647, %v1135_v11 }
  0xc8   :  { %584 = vrcp.f32 %v1179_v30  ;;  %v469_v46 = vsel %vm468_vm10, %v467_v10, %v465_v42  ;;  %v396_v50 = vmul.f32 %v1148_v48, %v395_v20  ;;  %vm472_vm11 = vcmask 589312  }
  0xc9   :  { %v583_v47 = vpop.eup %582  ;;  %v380_v39 = vsub.f32 1.0, %v379_v43  ;;  %v478_v53 = vadd.s32 4294967216, %v737_v18  ;;  %v475_v54 = vperm.slane %v331_v38, %v999_v62  ;;  %vm368_vm7 = vweird.f32 %v1135_v11 }
  0xca   :  { %v364_v56 = vmul.f32 %v583_v47, %v1135_v11  ;;  %v374_v57 = vand.u32 2147483648, %v1135_v11  ;;  %vm384_vm9 = vweird.f32 %v581_v32  ;;  %vm1197_vm12 = vcmp.eq.f32.partialorder %v387_v44, 8.507059e+37 }
  0xcb   :  { %v381_v59 = vmul.f32 %v581_v32, %v380_v39  ;;  %vm476_vm13 = vcmask 654912   ;;  %vm1201_vm14 = vcmp.eq.f32.partialorder %v372_v6, 8.507059e+37  ;;  %vm399_vm0 = vweird.f32 %v1148_v48  ;;  %vm385_vm3 = vmor %vm383_vm15, %vm384_vm9 }
  0xcc   :  { %v365_v40 = vsub.f32 1.0, %v364_v56  ;;  %vm1206_vm1 = vcmp.eq.f32.partialorder %v402_v60, 8.507059e+37  ;;  %v473_v16 = vsel %vm472_vm11, %v471_v49, %v469_v46  ;;  %vm369_vm2 = vweird.f32 %v583_v47  ;;  %vm1225_vm5 = vmor %vm398_vm8, %vm399_vm0 }
  0xcd   :  { %v382_v0 = vadd.f32 %v581_v32, %v381_v59  ;;  %v397_v34 = vadd.f32 %v1148_v48, %v396_v50  ;;  %v479_v4 = vperm.slane %v346_v35, %v478_v53  ;;  %v477_v8 = vsel %vm476_vm13, %v475_v54, %v473_v16  ;;  %vm370_vm6 = vmor %vm368_vm7, %vm369_vm2 }
  0xce   :  { %v585_v5 = vpop.eup %584  ;;  %v366_v23 = vmul.f32 %v583_v47, %v365_v40  ;;  %vm480_vm4 = vcmask 720512   ;;  %v482_v37 = vadd.s32 4294967208, %v737_v18  ;;  %v375_v12 = vor.u32 1.1754944e-38, %v374_v57 }
  0xcf   :  { %v409_v9 = vmul.f32 %v585_v5, %v1179_v30  ;;  %v386_v21 = vsel %vm385_vm3, %v581_v32, %v382_v0  ;;  %v490_v58 = vadd.s32 4294967192, %v737_v18  ;;  %v417_v52 = vand.u32 2147483647, %v1179_v30 }
  0xd0   :  { %v367_v33 = vadd.f32 %v583_v47, %v366_v23  ;;  %v391_v49 = vsel %vm1197_vm12, %v390_v45, %v386_v21  ;;  %v486_v17 = vadd.s32 4294967200, %v737_v18  ;;  %v401_v10 = vsel %vm1225_vm5, %v1148_v48, %v397_v34 }
  0xd1   :  { %v410_v51 = vsub.f32 1.0, %v409_v9  ;;  %v419_v14 = vand.u32 2147483648, %v1179_v30  ;;  %v481_v13 = vsel %vm480_vm4, %v479_v4, %v477_v8  ;;  %v483_v22 = vperm.slane %v1175_v36, %v482_v37 }
  0xd2   :  { %v371_v26 = vsel %vm370_vm6, %v583_v47, %v367_v33  ;;  %vm484_vm8 = vcmask 786112   ;;  %vm488_vm10 = vcmask 851712   ;;  %vm414_vm15 = vweird.f32 %v585_v5 }
  0xd3   :  { %v376_v3 = vsel %vm1201_vm14, %v375_v12, %v371_v26  ;;  %v411_v29 = vmul.f32 %v585_v5, %v410_v51  ;;  %v491_v11 = vperm.slane %v391_v49, %v490_v58  ;;  %vm413_vm11 = vweird.f32 %v1179_v30 }
  0xd4   :  { %v487_v41 = vperm.slane %v376_v3, %v486_v17  ;;  %vm492_vm7 = vcmask 917312   ;;  %v494_v48 = vadd.s32 4294967184, %v737_v18  ;;  %v406_v19 = vsel %vm1206_vm1, %v1181_v2, %v401_v10  ;;  %vm415_vm9 = vmor %vm413_vm11, %vm414_vm15 }
  0xd5   :  { %v412_v25 = vadd.f32 %v585_v5, %v411_v29  ;;  %v485_v61 = vsel %vm484_vm8, %v483_v22, %v481_v13  ;;  %v498_v7 = vadd.s32 4294967176, %v737_v18  ;;  %v420_v55 = vor.u32 1.1754944e-38, %v419_v14 }
  0xd6   :  { %v489_v27 = vsel %vm488_vm10, %v487_v41, %v485_v61  ;;  %vm418_vm12 = vcmp.eq.f32.partialorder %v417_v52, 8.507059e+37  ;;  %vm496_vm13 = vcmask 982912   ;;  %v495_v36 = vperm.slane %v406_v19, %v494_v48 }
  0xd7   :  { %v416_v1 = vsel %vm415_vm9, %v585_v5, %v412_v25  ;;  %v493_v28 = vsel %vm492_vm7, %v491_v11, %v489_v27  ;;  %vm500_vm14 = vcmask 1048512  }
  0xd8   :  { %v421_v31 = vsel %vm418_vm12, %v420_v55, %v416_v1  ;;  %v497_v42 = vsel %vm496_vm13, %v495_v36, %v493_v28 }
  0xd9   :  { %v499_v60 = vperm.slane %v421_v31, %v498_v7 }
  0xdb   :  { %v501_v18 = vsel %vm500_vm14, %v499_v60, %v497_v42 }
  0xdc   :  { %503 = vst [vmem:[#allocation3] sm:$0x1] %v501_v18 }
  0xdd   :  { %514 = dma.vmem_to_hbm [thread:$0]  %s510_s2, 16, %s512_s1, [#allocation4]  }
  0xde   :  { %610 = dma.done.wait [#allocation4], 16  }
  0xdf   :  { %611 = vsyncadd [#allocation4], 4294967280 }
  0xe0   :  { %519 = vsyncpa [#allocation4], 1 }

</bundles_post_ra>
